<compile_context>
chip_gen: v5e
topology: v5e:2x2
jax: 0.10.0
libtpu: 0.0.40
codegen_flags: <defaults>
</compile_context>

<pallas_src>
import math

import jax
import jax.numpy as jnp
import numpy as np
from jax import lax
from jax.experimental import pallas as pl
from jax.experimental.pallas import tpu as pltpu


def wavelet_cheb_kernel(lap_ref, xt_ref, thetat_ref, outt_ref, txcat_ref, acc_ref):
    """Grid = (K-1, Np//tm, Np//tc) = (recurrence step j, L row block mi, contraction block ni).

    lap_ref    VMEM (tm, tc) bf16|f32  L[mi-block, ni-block] (streamed; resident when tm=tc=Np)
    xt_ref     ANY  (in_p, Np) f32     x^T in HBM, manually DMA'd once into the slab
    thetat_ref VMEM (out_dim, K*in_p)  f32 concat_k(c_k * theta_k)^T (coeffs folded in)
    outt_ref   VMEM (out_dim, Np)      out^T, resident across the whole grid
    txcat_ref  VMEM (K*in_p, Np) f32   [T_0^T; T_1^T; ...; T_{K-1}^T] scratch slab
    acc_ref    VMEM (in_p, tm)  f32    partial contraction accumulator
    """
    in_p = acc_ref.shape[0]
    tm, tc = lap_ref.shape
    j = pl.program_id(0)           # this step computes T_{j+1}
    mi = pl.program_id(1)
    ni = pl.program_id(2)
    nk = pl.num_programs(0)
    nc = pl.num_programs(2)

    # Stage T_0^T = x^T into the slab once via manual DMA (x^T is not a pipelined
    # VMEM input, so no double-buffered (in_p, Np) footprint is paid).
    @pl.when((j == 0) & (mi == 0) & (ni == 0))
    def _():
        pltpu.sync_copy(xt_ref, txcat_ref.at[pl.ds(0, in_p), :])

    # Partial product: T_j^T[:, ni-block] . L[mi-block, ni-block]^T -> (in_p, tm).
    # Operands are cast to L's streamed dtype (bf16 by default) for a single-pass
    # MXU matmul; accumulation stays in f32.
    cur_row = pl.multiple_of(j * in_p, in_p)
    cur_col = pl.multiple_of(ni * tc, tc)
    cur_blk = txcat_ref[pl.ds(cur_row, in_p), pl.ds(cur_col, tc)]
    part = lax.dot_general(
        cur_blk.astype(lap_ref.dtype),
        lap_ref[...],
        dimension_numbers=(((1,), (1,)), ((), ())),   # contract over the node (lane) axis
        preferred_element_type=jnp.float32,
    )

    @pl.when(ni == 0)
    def _():
        acc_ref[...] = part

    @pl.when(ni > 0)
    def _():
        acc_ref[...] = acc_ref[...] + part

    col = pl.multiple_of(mi * tm, tm)
    dst_row = pl.multiple_of((j + 1) * in_p, in_p)
    last_n = ni == nc - 1

    # Contraction finished: finalize this column block of T_{j+1}^T in the slab.
    @pl.when(last_n & (j == 0))
    def _():                       # T_1 = L x
        txcat_ref[pl.ds(dst_row, in_p), pl.ds(col, tm)] = acc_ref[...]

    @pl.when(last_n & (j > 0))
    def _():                       # T_{j+1} = 2 L T_j - T_{j-1}
        prev_row = pl.multiple_of((j - 1) * in_p, in_p)
        prev_blk = txcat_ref[pl.ds(prev_row, in_p), pl.ds(col, tm)]
        txcat_ref[pl.ds(dst_row, in_p), pl.ds(col, tm)] = 2.0 * acc_ref[...] - prev_blk

    # Last recurrence step: this column block of every T_k is final; emit the output
    # columns with ONE lane-dense f32 matmul over the full K*in_p contraction
    # (coefficients already folded into thetat).
    @pl.when(last_n & (j == nk - 1))
    def _():
        tx_blk = txcat_ref[:, pl.ds(col, tm)]          # (K*in_p, tm) f32
        outt_ref[:, pl.ds(col, tm)] = jnp.dot(
            thetat_ref[...], tx_blk, preferred_element_type=jnp.float32,
        ).astype(outt_ref.dtype)


def _round_up(n, m):
    return ((n + m - 1) // m) * m


def _pick_tile(n, candidates):
    for c in candidates:
        if c <= n and n % c == 0:
            return c
    return n


def wavelet_cheb_conv(x, laplacian, theta, cheb_coeff, *,
                      lap_dtype=jnp.bfloat16, block_m=None, block_c=None):
    """x: (N, in_dim), laplacian: dense (N, N), theta: (K, in_dim, out_dim),
    cheb_coeff: (K,). Returns (N, out_dim). Requires K >= 2 (as the torch module).

    lap_dtype  dtype L is streamed in (bf16 default: ~2x less HBM traffic; the T_k
               slab and all accumulation stay f32). Use jnp.float32 for tight parity
               with the f32 reference.
    block_m/c  override the L row / contraction tile (forces the streaming path).
    """
    N, in_dim = x.shape
    K, _, out_dim = theta.shape
    if K < 2:
        raise ValueError("WaveletChebConv kernel requires K >= 2.")

    dtype = x.dtype
    in_p = _round_up(in_dim, 8)        # sublane-align the feature dim
    Np = _round_up(N, 128)             # lane-align the node dim (zero-padded)

    # Layout plumbing (done once in the wrapper, feature/parameter sized).  Zero
    # padding keeps the recurrence exact: padded rows/cols of L are zero, so padded
    # T_k rows and output rows stay zero and are sliced off at the end.
    xt = jnp.zeros((in_p, Np), jnp.float32).at[:in_dim, :N].set(
        x.astype(jnp.float32).T)
    lap = jnp.zeros((Np, Np), lap_dtype).at[:N, :N].set(laplacian.astype(lap_dtype))
    theta_sc = theta.astype(jnp.float32) * cheb_coeff.astype(jnp.float32)[:, None, None]
    thetat = jnp.zeros((K, in_p, out_dim), jnp.float32).at[:, :in_dim, :].set(theta_sc)
    thetat_cat = jnp.transpose(thetat, (2, 0, 1)).reshape(out_dim, K * in_p)  # f32

    l_esize = jnp.dtype(lap_dtype).itemsize
    o_esize = jnp.dtype(dtype).itemsize

    # Per-generation VMEM budget (v7x has only 64 MiB of VMEM per TensorCore).
    try:
        vmem_cap = int(pltpu.get_tpu_info().vmem_capacity_bytes)
    except Exception:
        vmem_cap = 64 * 1024 * 1024
    vmem_budget = vmem_cap - 8 * 1024 * 1024

    # VMEM that is resident regardless of the L tiling.
    resident = (4 * K * in_p * Np                 # T_k slab (f32 scratch)
                + 2 * 4 * out_dim * K * in_p      # theta (tiny, double-buffered)
                + 2 * o_esize * out_dim * Np)     # out^T block

    # Resident-L fast path: if the whole (double-buffered) L fits on-chip, use a
    # single full-extent L block -> constant block index, so L is DMA'd once instead
    # of being re-streamed (K-1) times.
    fits_resident_l = (resident + 2 * Np * Np * l_esize + 4 * in_p * Np) <= vmem_budget
    if block_m is None and block_c is None and fits_resident_l:
        tm, tc = Np, Np
    else:
        # Asymmetric streaming tiles: modest row block (bounds acc/vreg footprint),
        # long contraction block (amortizes the per-grid-step overhead).
        tm = block_m if block_m is not None else _pick_tile(Np, (512, 256, 128))
        tc = block_c if block_c is not None else _pick_tile(Np, (2048, 1024, 512, 256, 128))
    assert Np % tm == 0 and Np % tc == 0, "L tiles must divide the padded node dim"
    nblk_m, nblk_c = Np // tm, Np // tc

    vmem_est = resident + 4 * in_p * tm + 2 * tm * tc * l_esize
    if vmem_est > vmem_budget:
        # TODO(synk): outer node-block grid axis with the slab in HBM for very large N.
        raise ValueError(
            f"WaveletChebConv: estimated VMEM {vmem_est / 2**20:.1f} MiB exceeds the "
            f"budget {vmem_budget / 2**20:.1f} MiB; reduce N or the L tile sizes.")
    vmem_limit = int(min(max(2 * vmem_est, 32 * 1024 * 1024), vmem_budget))

    l_reads = (1 if (nblk_m == 1 and nblk_c == 1) else (K - 1)) * Np * Np * l_esize
    flops = 2 * (K - 1) * Np * Np * in_p + 2 * Np * K * in_p * out_dim
    bytes_accessed = int(l_reads + 4 * in_p * Np + 4 * out_dim * K * in_p
                         + o_esize * out_dim * Np)

    outt = pl.pallas_call(
        wavelet_cheb_kernel,
        out_shape=jax.ShapeDtypeStruct((out_dim, Np), dtype),
        grid_spec=pltpu.PrefetchScalarGridSpec(
            num_scalar_prefetch=0,
            grid=(K - 1, nblk_m, nblk_c),
            in_specs=[
                pl.BlockSpec((tm, tc), lambda j, mi, ni: (mi, ni)),           # L tiles
                pl.BlockSpec(memory_space=pl.ANY),                            # x^T (HBM)
                pl.BlockSpec((out_dim, K * in_p), lambda j, mi, ni: (0, 0)),  # theta
            ],
            out_specs=pl.BlockSpec((out_dim, Np), lambda j, mi, ni: (0, 0)),  # out^T
            scratch_shapes=[
                pltpu.VMEM((K * in_p, Np), jnp.float32),   # [T_0 .. T_{K-1}]^T slab
                pltpu.VMEM((in_p, tm), jnp.float32),       # contraction accumulator
            ],
        ),
        compiler_params=pltpu.CompilerParams(
            dimension_semantics=("arbitrary", "arbitrary", "arbitrary"),
            vmem_limit_bytes=vmem_limit,
        ),
        cost_estimate=pl.CostEstimate(
            flops=int(flops), transcendentals=0, bytes_accessed=bytes_accessed),
    )(lap, xt, thetat_cat)

    return outt[:, :N].T   # (N, out_dim)


def compute_chebyshev_coeff(K, tau):
    # c_k = (2/K) * exp(-tau * cos(pi * (k + 0.5) / K)), matching the PyTorch module.
    ks = np.arange(K, dtype=np.float64)
    xk = np.cos(np.pi * (ks + 0.5) / K)
    ck = (2.0 / K) * np.exp(-tau * xk)
    return jnp.asarray(ck, dtype=jnp.float32)


def xavier_uniform(key, K, in_dim, out_dim):
    # PyTorch xavier_uniform_ on a (K, in_dim, out_dim) tensor:
    # fan_in = in_dim * out_dim, fan_out = K * out_dim
    fan_in = in_dim * out_dim
    fan_out = K * out_dim
    bound = math.sqrt(6.0 / (fan_in + fan_out))
    return jax.random.uniform(
        key, (K, in_dim, out_dim), minval=-bound, maxval=bound, dtype=jnp.float32
    )


def reference_forward(x, laplacian, theta, cheb_coeff):
    K = theta.shape[0]
    mm = lambda a, b: jnp.matmul(a, b, precision=lax.Precision.HIGHEST)
    tx = [x, mm(laplacian, x)]
    for _ in range(2, K):
        tx.append(2.0 * mm(laplacian, tx[-1]) - tx[-2])
    tx_stack = jnp.stack(tx, axis=0)
    return jnp.einsum("kni,kio,k->no", tx_stack, theta, cheb_coeff,
                      precision=lax.Precision.HIGHEST)


def _make_graph(key_x, key_a, n, in_dim):
    x = jax.random.normal(key_x, (n, in_dim), dtype=jnp.float32)
    a = jnp.abs(jax.random.normal(key_a, (n, n), dtype=jnp.float32))
    a = 0.5 * (a + a.T)
    d_inv_sqrt = 1.0 / jnp.sqrt(jnp.sum(a, axis=1) + 1e-6)
    lap = jnp.eye(n, dtype=jnp.float32) - d_inv_sqrt[:, None] * a * d_inv_sqrt[None, :]
    return x, lap


if __name__ == "__main__":
    N, in_dim, out_dim, K, tau = 64, 32, 16, 5, 0.5

    key = jax.random.PRNGKey(0)
    k_x, k_a, k_t, k_x2, k_a2, k_x3, k_a3 = jax.random.split(key, 7)

    theta = xavier_uniform(k_t, K, in_dim, out_dim)
    cheb_coeff = compute_chebyshev_coeff(K, tau)

    # 1) Small demo graph. Exact f32-L path (tight check), then the default bf16-L
    #    streaming path (loose check: L is rounded to bf16).
    x, laplacian = _make_graph(k_x, k_a, N, in_dim)
    ref = reference_forward(x, laplacian, theta, cheb_coeff)
    out_f32 = jax.block_until_ready(
        wavelet_cheb_conv(x, laplacian, theta, cheb_coeff, lap_dtype=jnp.float32))
    assert out_f32.shape == (N, out_dim)
    np.testing.assert_allclose(np.asarray(out_f32), np.asarray(ref), rtol=5e-4, atol=5e-4)

    out_bf16 = jax.block_until_ready(
        wavelet_cheb_conv(x, laplacian, theta, cheb_coeff))
    np.testing.assert_allclose(np.asarray(out_bf16), np.asarray(ref), rtol=5e-2, atol=5e-2)

    # 2) Multi-block streaming-L path (exercises the accumulator + per-block emission).
    N2 = 256
    x2, lap2 = _make_graph(k_x2, k_a2, N2, in_dim)
    ref2 = reference_forward(x2, lap2, theta, cheb_coeff)
    out2 = jax.block_until_ready(
        wavelet_cheb_conv(x2, lap2, theta, cheb_coeff,
                          lap_dtype=jnp.float32, block_m=128, block_c=128))
    np.testing.assert_allclose(np.asarray(out2), np.asarray(ref2), rtol=5e-4, atol=5e-4)

    # 2b) Asymmetric tiles with bf16 L streaming.
    out2b = jax.block_until_ready(
        wavelet_cheb_conv(x2, lap2, theta, cheb_coeff, block_m=128, block_c=256))
    np.testing.assert_allclose(np.asarray(out2b), np.asarray(ref2), rtol=5e-2, atol=5e-2)

    # 3) N not a multiple of 128 -> zero-padding path.
    N3 = 200
    x3, lap3 = _make_graph(k_x3, k_a3, N3, in_dim)
    ref3 = reference_forward(x3, lap3, theta, cheb_coeff)
    out3 = jax.block_until_ready(
        wavelet_cheb_conv(x3, lap3, theta, cheb_coeff, lap_dtype=jnp.float32))
    assert out3.shape == (N3, out_dim)
    np.testing.assert_allclose(np.asarray(out3), np.asarray(ref3), rtol=5e-4, atol=5e-4)

    print("KERNEL_OK")
</pallas_src>

<mosaic_0001>
module attributes {stable_mosaic.version = 11 : i64} {
  func.func @wavelet_cheb_kernel(%arg0: i32, %arg1: i32, %arg2: i32, %arg3: memref<128x128xf32, #tpu.memory_space<vmem>>, %arg4: memref<32x128xf32, #tpu.memory_space<any>>, %arg5: memref<16x160xf32, #tpu.memory_space<vmem>>, %arg6: memref<16x128xf32, #tpu.memory_space<vmem>>, %arg7: memref<160x128xf32, #tpu.memory_space<vmem>>, %arg8: memref<32x128xf32, #tpu.memory_space<vmem>>) attributes {dimension_semantics = [#tpu.dimension_semantics<arbitrary>, #tpu.dimension_semantics<arbitrary>, #tpu.dimension_semantics<arbitrary>], iteration_bounds = array<i64: 4, 1, 1>, scalar_prefetch = 0 : i64, scratch_operands = 2 : i64, tpu.core_type = #tpu.core_type<tc>, window_params = [{transform_indices = @transform_0, window_bounds = array<i64: 128, 128>}, {}, {pipeline_mode = #tpu.pipeline_mode<synchronous>, transform_indices = @transform_2, window_bounds = array<i64: 16, 160>}, {pipeline_mode = #tpu.pipeline_mode<synchronous>, transform_indices = @transform_3, window_bounds = array<i64: 16, 128>}]} {
    %c0_i32 = arith.constant 0 : i32
    %0 = arith.cmpi eq, %arg0, %c0_i32 : i32
    %c0_i32_0 = arith.constant 0 : i32
    %1 = arith.cmpi eq, %arg1, %c0_i32_0 : i32
    %2 = arith.andi %0, %1 : i1
    %c0_i32_1 = arith.constant 0 : i32
    %3 = arith.cmpi eq, %arg2, %c0_i32_1 : i32
    %4 = arith.andi %2, %3 : i1
    %5 = arith.extui %4 : i1 to i32
    %c0_i32_2 = arith.constant 0 : i32
    %6 = arith.cmpi ne, %5, %c0_i32_2 : i32
    scf.if %6 {
      "tpu.region"() ({
        %40 = tpu.sem_alloc : memref<!tpu.dma_semaphore, #tpu.memory_space<semaphore_mem>>
        %c0_i32_16 = arith.constant 0 : i32
        %c0_i32_17 = arith.constant 0 : i32
        %41 = tpu.memref_slice %arg7[%c0_i32_16, %c0_i32_17] : memref<160x128xf32, #tpu.memory_space<vmem>> -> memref<32x128xf32, #tpu.memory_space<vmem>>
        tpu.enqueue_dma source(%arg4 : memref<32x128xf32, #tpu.memory_space<any>>) target(%41 : memref<32x128xf32, #tpu.memory_space<vmem>>) target_semaphore(%40 : memref<!tpu.dma_semaphore, #tpu.memory_space<semaphore_mem>>)
        %c0_i32_18 = arith.constant 0 : i32
        %c0_i32_19 = arith.constant 0 : i32
        %42 = tpu.memref_slice %arg7[%c0_i32_18, %c0_i32_19] : memref<160x128xf32, #tpu.memory_space<vmem>> -> memref<32x128xf32, #tpu.memory_space<vmem>>
        tpu.wait_dma2 semaphore(%40 : memref<!tpu.dma_semaphore, #tpu.memory_space<semaphore_mem>>) src(%arg4 : memref<32x128xf32, #tpu.memory_space<any>>) dst(%42 : memref<32x128xf32, #tpu.memory_space<vmem>>)
        tpu.yield
      }) : () -> ()
    } else {
    }
    %c32_i32 = arith.constant 32 : i32
    %7 = arith.muli %arg0, %c32_i32 : i32
    %8 = tpu.assume_multiple %7, 32 : i32
    %c128_i32 = arith.constant 128 : i32
    %9 = arith.muli %arg2, %c128_i32 : i32
    %10 = tpu.assume_multiple %9, 128 : i32
    %11 = arith.index_cast %8 : i32 to index
    %12 = arith.index_cast %10 : i32 to index
    %13 = vector.load %arg7[%11, %12] : memref<160x128xf32, #tpu.memory_space<vmem>>, vector<32x128xf32>
    %c0 = arith.constant 0 : index
    %c0_3 = arith.constant 0 : index
    %14 = vector.load %arg3[%c0, %c0_3] : memref<128x128xf32, #tpu.memory_space<vmem>>, vector<128x128xf32>
    %cst = arith.constant dense<0.000000e+00> : vector<32x128xf32>
    %15 = tpu.matmul %13, %14, %cst {dimension_numbers = #tpu.dot_dimension_numbers<[1], [1], [0], [0], [0, 0, 1, 0], [], []>} : vector<32x128xf32>, vector<128x128xf32>, vector<32x128xf32> -> vector<32x128xf32>
    %c0_i32_4 = arith.constant 0 : i32
    %16 = arith.cmpi eq, %arg2, %c0_i32_4 : i32
    %17 = arith.extui %16 : i1 to i32
    %c0_i32_5 = arith.constant 0 : i32
    %18 = arith.cmpi ne, %17, %c0_i32_5 : i32
    scf.if %18 {
      %c0_16 = arith.constant 0 : index
      %c0_17 = arith.constant 0 : index
      %40 = vector.load %arg8[%c0_16, %c0_17] : memref<32x128xf32, #tpu.memory_space<vmem>>, vector<32x128xf32>
      tpu.vector_store %arg8[%c0_16, %c0_17], %15 {strides = array<i32>} : memref<32x128xf32, #tpu.memory_space<vmem>>, vector<32x128xf32>,
    } else {
    }
    %c0_i32_6 = arith.constant 0 : i32
    %19 = arith.cmpi sgt, %arg2, %c0_i32_6 : i32
    %20 = arith.extui %19 : i1 to i32
    %c0_i32_7 = arith.constant 0 : i32
    %21 = arith.cmpi ne, %20, %c0_i32_7 : i32
    scf.if %21 {
      %c0_16 = arith.constant 0 : index
      %c0_17 = arith.constant 0 : index
      %40 = vector.load %arg8[%c0_16, %c0_17] : memref<32x128xf32, #tpu.memory_space<vmem>>, vector<32x128xf32>
      %41 = arith.addf %40, %15 : vector<32x128xf32>
      %c0_18 = arith.constant 0 : index
      %c0_19 = arith.constant 0 : index
      %42 = vector.load %arg8[%c0_18, %c0_19] : memref<32x128xf32, #tpu.memory_space<vmem>>, vector<32x128xf32>
      tpu.vector_store %arg8[%c0_18, %c0_19], %41 {strides = array<i32>} : memref<32x128xf32, #tpu.memory_space<vmem>>, vector<32x128xf32>,
    } else {
    }
    %c128_i32_8 = arith.constant 128 : i32
    %22 = arith.muli %arg1, %c128_i32_8 : i32
    %23 = tpu.assume_multiple %22, 128 : i32
    %c1_i32 = arith.constant 1 : i32
    %24 = arith.addi %arg0, %c1_i32 : i32
    %c32_i32_9 = arith.constant 32 : i32
    %25 = arith.muli %24, %c32_i32_9 : i32
    %26 = tpu.assume_multiple %25, 32 : i32
    %c0_i32_10 = arith.constant 0 : i32
    %27 = arith.cmpi eq, %arg2, %c0_i32_10 : i32
    %c0_i32_11 = arith.constant 0 : i32
    %28 = arith.cmpi eq, %arg0, %c0_i32_11 : i32
    %29 = arith.andi %27, %28 : i1
    %30 = arith.extui %29 : i1 to i32
    %c0_i32_12 = arith.constant 0 : i32
    %31 = arith.cmpi ne, %30, %c0_i32_12 : i32
    scf.if %31 {
      %c0_16 = arith.constant 0 : index
      %c0_17 = arith.constant 0 : index
      %40 = vector.load %arg8[%c0_16, %c0_17] : memref<32x128xf32, #tpu.memory_space<vmem>>, vector<32x128xf32>
      %41 = arith.index_cast %26 : i32 to index
      %42 = arith.index_cast %23 : i32 to index
      %43 = vector.load %arg7[%41, %42] : memref<160x128xf32, #tpu.memory_space<vmem>>, vector<32x128xf32>
      tpu.vector_store %arg7[%41, %42], %40 {strides = array<i32>} : memref<160x128xf32, #tpu.memory_space<vmem>>, vector<32x128xf32>,
    } else {
    }
    %c0_i32_13 = arith.constant 0 : i32
    %32 = arith.cmpi sgt, %arg0, %c0_i32_13 : i32
    %33 = arith.andi %27, %32 : i1
    %34 = arith.extui %33 : i1 to i32
    %c0_i32_14 = arith.constant 0 : i32
    %35 = arith.cmpi ne, %34, %c0_i32_14 : i32
    scf.if %35 {
      %c1_i32_16 = arith.constant 1 : i32
      %40 = arith.subi %arg0, %c1_i32_16 : i32
      %c32_i32_17 = arith.constant 32 : i32
      %41 = arith.muli %40, %c32_i32_17 : i32
      %42 = tpu.assume_multiple %41, 32 : i32
      %43 = arith.index_cast %42 : i32 to index
      %44 = arith.index_cast %23 : i32 to index
      %45 = vector.load %arg7[%43, %44] : memref<160x128xf32, #tpu.memory_space<vmem>>, vector<32x128xf32>
      %c0_18 = arith.constant 0 : index
      %c0_19 = arith.constant 0 : index
      %46 = vector.load %arg8[%c0_18, %c0_19] : memref<32x128xf32, #tpu.memory_space<vmem>>, vector<32x128xf32>
      %cst_20 = arith.constant 2.000000e+00 : f32
      %47 = vector.broadcast %cst_20 : f32 to vector<32x128xf32>
      %48 = arith.mulf %47, %46 : vector<32x128xf32>
      %49 = arith.subf %48, %45 : vector<32x128xf32>
      %50 = arith.index_cast %26 : i32 to index
      %51 = arith.index_cast %23 : i32 to index
      %52 = vector.load %arg7[%50, %51] : memref<160x128xf32, #tpu.memory_space<vmem>>, vector<32x128xf32>
      tpu.vector_store %arg7[%50, %51], %49 {strides = array<i32>} : memref<160x128xf32, #tpu.memory_space<vmem>>, vector<32x128xf32>,
    } else {
    }
    %c3_i32 = arith.constant 3 : i32
    %36 = arith.cmpi eq, %arg0, %c3_i32 : i32
    %37 = arith.andi %27, %36 : i1
    %38 = arith.extui %37 : i1 to i32
    %c0_i32_15 = arith.constant 0 : i32
    %39 = arith.cmpi ne, %38, %c0_i32_15 : i32
    scf.if %39 {
      %c0_16 = arith.constant 0 : index
      %40 = arith.index_cast %23 : i32 to index
      %41 = vector.load %arg7[%c0_16, %40] : memref<160x128xf32, #tpu.memory_space<vmem>>, vector<160x128xf32>
      %c0_17 = arith.constant 0 : index
      %c0_18 = arith.constant 0 : index
      %42 = vector.load %arg5[%c0_17, %c0_18] : memref<16x160xf32, #tpu.memory_space<vmem>>, vector<16x160xf32>
      %cst_19 = arith.constant dense<0.000000e+00> : vector<16x128xf32>
      %43 = tpu.matmul %42, %41, %cst_19 {dimension_numbers = #tpu.dot_dimension_numbers<[1], [0], [0], [1], [0, 0, 1, 1], [], []>} : vector<16x160xf32>, vector<160x128xf32>, vector<16x128xf32> -> vector<16x128xf32>
      %c0_20 = arith.constant 0 : index
      %44 = arith.index_cast %23 : i32 to index
      %45 = vector.load %arg6[%c0_20, %44] : memref<16x128xf32, #tpu.memory_space<vmem>>, vector<16x128xf32>
      tpu.vector_store %arg6[%c0_20, %44], %43 {strides = array<i32>} : memref<16x128xf32, #tpu.memory_space<vmem>>, vector<16x128xf32>,
    } else {
    }
    return
  }
  func.func @transform_0(%arg0: i32, %arg1: i32, %arg2: i32) -> (i32, i32) {
    %c0_i32 = arith.constant 0 : i32
    return %arg1, %arg2 : i32, i32
  }
  func.func @transform_2(%arg0: i32, %arg1: i32, %arg2: i32) -> (i32, i32) {
    %c0_i32 = arith.constant 0 : i32
    %c0_i32_0 = arith.constant 0 : i32
    %c0_i32_1 = arith.constant 0 : i32
    return %c0_i32, %c0_i32_0 : i32, i32
  }
  func.func @transform_3(%arg0: i32, %arg1: i32, %arg2: i32) -> (i32, i32) {
    %c0_i32 = arith.constant 0 : i32
    %c0_i32_0 = arith.constant 0 : i32
    %c0_i32_1 = arith.constant 0 : i32
    return %c0_i32, %c0_i32_0 : i32, i32
  }
}

</mosaic_0001>

<bundles_post_ra>
// kernel: tpu_custom_call.1
= control target key start
LH: loop header
LB: loop body
LE: loop exit
PB: predicated region body
PF: predicated region fallthrough
CT: control target
= control target key end

     0   :  { %8 = vsyncpa [#allocation5], 0  ;;  %s943_s0 = inlined_call_operand.hbm [shape: f32[128,128], index: 0, kind: input, shape index: {}]   ;;  %s944_s1 = inlined_call_operand.hbm [shape: f32[32,128], index: 1, kind: input, shape index: {}]   ;;  %s945_s2 = inlined_call_operand.hbm [shape: f32[16,160], index: 2, kind: input, shape index: {}]   ;;  %s946_s3 = inlined_call_operand.hbm [shape: f32[16,128], index: 3, kind: output, shape index: {}]  }
   0x1   :  { %9 = vsyncpa [#allocation8], 0 }
   0x2   :  { %10 = vsyncpa [#allocation6], 0  ;;  %s850_s12 = smov 0   ;;  %s852_s13 = smov 0  }
   0x3   :  { %s854_s14 = smov 0  }
   0x4 LB: > { %s511_s15 = sadd.s32 4294967295, %s818_s14   ;;  %s35_s16 = sadd.s32 1, %s814_s13  ;;  %s818_s14 = sphi %s854_s14, %s16_s14   ;;  %s814_s13 = sphi %s852_s13, %s950_s13   ;;  %s810_s12 = sphi %s850_s12, %s949_s12  }
   0x5   : > { %p37_p0 = scmp.ge.s32.totalorder %s35_s16, 4  ;;  %p512_p1 = scmp.ge.s32.totalorder %s818_s14, 1 }
   0x6   : > { %p110_p2 = scmp.lt.s32.totalorder %s818_s14, 5  ;;  %p877_p4 = scmp.eq.s32.totalorder %s511_s15, 0 }
   0x7   : > { %s952_s16 = smov (%p37_p0, %s35_s16), 0  ;;  %s125_s21 = sshll.u32 %s943_s0, 4  ;;  %s126_s21 = int_to_ptr.hbm [resolvable:$true] %s125_s21 }
   0x8   : > { %p871_p3 = pnand %p512_p1, %p110_p2  ;;  %s820_s22 = smov [#allocation4]  }
   0x9   : > { %s127_s23 = sshll.u32 %s820_s22, 4  ;;  %s139_s26 = sshll.u32 %s945_s2, 4  ;;  %s128_s23 = int_to_ptr.vmem [resolvable:$true] %s127_s23  ;;  %s140_s26 = int_to_ptr.hbm [resolvable:$true] %s139_s26 }
   0xa   : > { %p623_p5 = pneg %p871_p3  ;;  %s821_s27 = smov 128  }
   0xb   : > { %s822_s28 = smov 8   ;;  %s823_s29 = smov [#allocation7]  }
   0xc   : > { %p624_p6 = pnand %p877_p4, %p623_p5  ;;  %s141_s30 = sshll.u32 %s823_s29, 4  ;;  %s142_s30 = int_to_ptr.vmem [resolvable:$true] %s141_s30 }
   0xd   : > { %s824_s4 = smov 256   ;;  %s825_s5 = smov 16  }
   0xe   : > { %626 = dma.hbm_to_vmem [thread:$0]  (!%p624_p6), %s126_s21, 2048, %s128_s23, [#allocation5], %s821_s27, %s821_s27, %s822_s28  }
   0xf   : > { %629 = dma.hbm_to_vmem [thread:$0]  (!%p624_p6), %s140_s26, 512, %s142_s30, [#allocation8], %s824_s4, %s824_s4, %s825_s5  }
  0x10   : > { %157 = sbr.rel (%p871_p3) target bundleno = 434 (0x1b2), region = 28 }
  0x15   : > { %795 = dma.done.wait (%p877_p4), [#allocation5], 2048  }
  0x16   : > { %797 = vsyncadd (%p877_p4), [#allocation5], 4294965248 }
  0x17   : > { %799 = dma.done.wait (%p877_p4), [#allocation8], 512  }
  0x18   : > { %801 = vsyncadd (%p877_p4), [#allocation8], 4294966784  ;;  %p176_p7 = scmp.eq.s32.totalorder %s810_s12, 0 }
  0x1a   : > { %184 = sbr.rel (!%p176_p7) target bundleno = 36 (0x24), region = 40 }
  0x1f   : > { %s192_s8 = sshll.u32 %s944_s1, 4  ;;  %s826_s9 = smov [#allocation2]   ;;  %s193_s8 = int_to_ptr.hbm [resolvable:$true] %s192_s8 }
  0x20   : > { %s194_s10 = sshll.u32 %s826_s9, 4  ;;  %s195_s10 = int_to_ptr.vmem [resolvable:$true] %s194_s10 }
  0x21   : > { %197 = dma.hbm_to_vmem [thread:$0]  %s193_s8, 512, %s195_s10, [#allocation10] }
  0x22   : > { %802 = dma.done.wait [#allocation10], 512 }
  0x23   : > { %803 = vsyncadd [#allocation10], 4294966784 }
  0x24 PF: > { %v226_v0 = vld [vmem:[#allocation4 + $0x78] sm:$0xff]  ;;  %v225_v1 = vld [vmem:[#allocation4 + $0x70] sm:$0xff]  ;;  %v224_v2 = vld [vmem:[#allocation4 + $0x68] sm:$0xff]  ;;  %s520_s11 = sshll.u32 %s810_s12, 5 }
  0x25   : > { %548 = vmatpush.xpose.msra.mxu2 %v226_v0  ;;  %549 = vmatpush.xpose.msra.mxu3 %v226_v0  ;;  %v223_v3 = vld [vmem:[#allocation4 + $0x60] sm:$0xff]  ;;  %v222_v4 = vld [vmem:[#allocation4 + $0x58] sm:$0xff]  ;;  %v221_v5 = vld [vmem:[#allocation4 + $0x50] sm:$0xff]  ;;  %s908_s17 = scalar_lea.vmem [#allocation2], %s520_s11 }
  0x26   : > { %227 = vmatpush.xpose.msra.mxu0 %v226_v0  ;;  %547 = vmatpush.xpose.msra.mxu1 %v226_v0  ;;  %v220_v6 = vld [vmem:[#allocation4 + $0x48] sm:$0xff]  ;;  %v219_v7 = vld [vmem:[#allocation4 + $0x40] sm:$0xff]  ;;  %v218_v8 = vld [vmem:[#allocation4 + $0x38] sm:$0xff] }
  0x27   : > { %v217_v9 = vld [vmem:[#allocation4 + $0x30] sm:$0xff]  ;;  %v216_v10 = vld [vmem:[#allocation4 + $0x28] sm:$0xff]  ;;  %v215_v11 = vld [vmem:[#allocation4 + $0x20] sm:$0xff] }
  0x28   : > { %v214_v12 = vld [vmem:[#allocation4 + $0x18] sm:$0xff]  ;;  %v213_v13 = vld [vmem:[#allocation4 + $0x10] sm:$0xff]  ;;  %v212_v14 = vld [vmem:[#allocation4 + $0x8] sm:$0xff] }
  0x29   : > { %551 = vmatpush.xpose.msra.mxu2 %v225_v1  ;;  %552 = vmatpush.xpose.msra.mxu3 %v225_v1  ;;  %v211_v15 = vld [vmem:[#allocation4] sm:$0xff]  ;;  %v209_v16 = vld [vmem:[%s908_s17 + $0x10] sm:$0xff]  ;;  %v210_v17 = vld [vmem:[%s908_s17 + $0x18] sm:$0xff] }
  0x2a   : > { %228 = vmatpush.xpose.msra.mxu0 %v225_v1  ;;  %550 = vmatpush.xpose.msra.mxu1 %v225_v1  ;;  %v207_v18 = vld [vmem:[%s908_s17] sm:$0xff]  ;;  %v208_v19 = vld [vmem:[%s908_s17 + $0x8] sm:$0xff] }
  0x2d   : > { %554 = vmatpush.xpose.msra.mxu2 %v224_v2  ;;  %555 = vmatpush.xpose.msra.mxu3 %v224_v2 }
  0x2e   : > { %229 = vmatpush.xpose.msra.mxu0 %v224_v2  ;;  %553 = vmatpush.xpose.msra.mxu1 %v224_v2 }
  0x31   : > { %557 = vmatpush.xpose.msra.mxu2 %v223_v3  ;;  %558 = vmatpush.xpose.msra.mxu3 %v223_v3 }
  0x32   : > { %230 = vmatpush.xpose.msra.mxu0 %v223_v3  ;;  %556 = vmatpush.xpose.msra.mxu1 %v223_v3 }
  0x35   : > { %560 = vmatpush.xpose.msra.mxu2 %v222_v4  ;;  %561 = vmatpush.xpose.msra.mxu3 %v222_v4 }
  0x36   : > { %231 = vmatpush.xpose.msra.mxu0 %v222_v4  ;;  %559 = vmatpush.xpose.msra.mxu1 %v222_v4 }
  0x39   : > { %563 = vmatpush.xpose.msra.mxu2 %v221_v5  ;;  %564 = vmatpush.xpose.msra.mxu3 %v221_v5 }
  0x3a   : > { %232 = vmatpush.xpose.msra.mxu0 %v221_v5  ;;  %562 = vmatpush.xpose.msra.mxu1 %v221_v5 }
  0x3d   : > { %566 = vmatpush.xpose.msra.mxu2 %v220_v6  ;;  %567 = vmatpush.xpose.msra.mxu3 %v220_v6 }
  0x3e   : > { %233 = vmatpush.xpose.msra.mxu0 %v220_v6  ;;  %565 = vmatpush.xpose.msra.mxu1 %v220_v6 }
  0x41   : > { %569 = vmatpush.xpose.msra.mxu2 %v219_v7  ;;  %570 = vmatpush.xpose.msra.mxu3 %v219_v7 }
  0x42   : > { %234 = vmatpush.xpose.msra.mxu0 %v219_v7  ;;  %568 = vmatpush.xpose.msra.mxu1 %v219_v7 }
  0x45   : > { %572 = vmatpush.xpose.msra.mxu2 %v218_v8  ;;  %573 = vmatpush.xpose.msra.mxu3 %v218_v8 }
  0x46   : > { %235 = vmatpush.xpose.msra.mxu0 %v218_v8  ;;  %571 = vmatpush.xpose.msra.mxu1 %v218_v8 }
  0x49   : > { %575 = vmatpush.xpose.msra.mxu2 %v217_v9  ;;  %576 = vmatpush.xpose.msra.mxu3 %v217_v9 }
  0x4a   : > { %236 = vmatpush.xpose.msra.mxu0 %v217_v9  ;;  %574 = vmatpush.xpose.msra.mxu1 %v217_v9 }
  0x4d   : > { %578 = vmatpush.xpose.msra.mxu2 %v216_v10  ;;  %579 = vmatpush.xpose.msra.mxu3 %v216_v10 }
  0x4e   : > { %237 = vmatpush.xpose.msra.mxu0 %v216_v10  ;;  %577 = vmatpush.xpose.msra.mxu1 %v216_v10 }
  0x51   : > { %581 = vmatpush.xpose.msra.mxu2 %v215_v11  ;;  %582 = vmatpush.xpose.msra.mxu3 %v215_v11 }
  0x52   : > { %238 = vmatpush.xpose.msra.mxu0 %v215_v11  ;;  %580 = vmatpush.xpose.msra.mxu1 %v215_v11 }
  0x55   : > { %584 = vmatpush.xpose.msra.mxu2 %v214_v12  ;;  %585 = vmatpush.xpose.msra.mxu3 %v214_v12 }
  0x56   : > { %239 = vmatpush.xpose.msra.mxu0 %v214_v12  ;;  %583 = vmatpush.xpose.msra.mxu1 %v214_v12 }
  0x59   : > { %587 = vmatpush.xpose.msra.mxu2 %v213_v13  ;;  %588 = vmatpush.xpose.msra.mxu3 %v213_v13 }
  0x5a   : > { %240 = vmatpush.xpose.msra.mxu0 %v213_v13  ;;  %586 = vmatpush.xpose.msra.mxu1 %v213_v13 }
  0x5d   : > { %590 = vmatpush.xpose.msra.mxu2 %v212_v14  ;;  %591 = vmatpush.xpose.msra.mxu3 %v212_v14 }
  0x5e   : > { %241 = vmatpush.xpose.msra.mxu0 %v212_v14  ;;  %589 = vmatpush.xpose.msra.mxu1 %v212_v14 }
  0x61   : > { %593 = vmatpush.xpose.msra.mxu2 %v211_v15  ;;  %594 = vmatpush.xpose.msra.mxu3 %v211_v15 }
  0x62   : > { %242 = vmatpush.xpose.msra.mxu0 %v211_v15  ;;  %592 = vmatpush.xpose.msra.mxu1 %v211_v15 }
  0x64   : > { %249 = vmatmul.f32.vlgmr.msra.gmra.mxu2 %v209_v16  ;;  %252 = vmatmul.f32.vlgmr.msra.gmra.mxu3 %v210_v17 }
  0x65   : > { %243 = vmatmul.f32.vlgmr.msra.gmra.mxu0 %v207_v18  ;;  %246 = vmatmul.f32.vlgmr.msra.gmra.mxu1 %v208_v19 }
  0xe2   : > { %v244_v20 = vpop.f32.mrf.mxu0  ;;  %v247_v21 = vpop.f32.mrf.mxu1 }
  0xe3   : > { %259 = vst [vmem:[#allocation3 + $0x10] sm:$0xff] %v244_v20 }
  0xe4   : > { %260 = vst [vmem:[#allocation3] sm:$0xff] %v247_v21 }
  0xe5   : > { %285 = sbr.rel (!%p176_p7) target bundleno = 242 (0xf2), region = 57 }
  0xe7   : > { %v250_v22 = vpop.f32.mrf.mxu2  ;;  %v253_v23 = vpop.f32.mrf.mxu3 }
  0xe8   : > { %261 = vst [vmem:[#allocation3 + $0x18] sm:$0xff] %v250_v22 }
  0xe9   : > { %262 = vst [vmem:[#allocation3 + $0x8] sm:$0xff] %v253_v23 }
  0xea   : > { %v286_v24 = vld [vmem:[#allocation3 + $0x10] sm:$0xff] }
  0xeb   : > { %v287_v25 = vld [vmem:[#allocation3] sm:$0xff]  ;;  %523 = vst [vmem:[%s908_s17 + $0x20] sm:$0xff] %v286_v24 }
  0xec   : > { %524 = vst [vmem:[%s908_s17 + $0x28] sm:$0xff] %v287_v25 }
  0xef   : > { %v288_v26 = vld [vmem:[#allocation3 + $0x18] sm:$0xff] }
  0xf0   : > { %v289_v27 = vld [vmem:[#allocation3 + $0x8] sm:$0xff]  ;;  %525 = vst [vmem:[%s908_s17 + $0x30] sm:$0xff] %v288_v26 }
  0xf1   : > { %526 = vst [vmem:[%s908_s17 + $0x38] sm:$0xff] %v289_v27 }
  0xf2 PF: > { %p298_p8 = scmp.gt.s32.totalorder %s810_s12, 0 }
  0xf3   : > { %s528_s18 = sadd.s32 (%p298_p8), 4294967295, %s810_s12  ;;  %v313_v28 = vld [vmem:[#allocation3 + $0x10] sm:$0xff] (%p298_p8)  ;;  %v314_v29 = vld [vmem:[#allocation3] sm:$0xff] (%p298_p8) }
  0xf4   : > { %302 = sbr.rel (!%p298_p8) target bundleno = 255 (0xff), region = 61  ;;  %s529_s19 = sshll.u32 (%p298_p8), %s528_s18, 5  ;;  %v317_v31 = vmul.f32 (%p298_p8), 2.0, %v313_v28  ;;  %v318_v32 = vmul.f32 (%p298_p8), 2.0, %v314_v29 }
  0xf5   : > { %s308_s20 = scalar_lea.vmem (%p298_p8), [#allocation2], %s529_s19 }
  0xf7   : > { %v315_v30 = vld [vmem:[#allocation3 + $0x18] sm:$0xff] (%p298_p8) }
  0xf8   : > { %v319_v33 = vmul.f32 (%p298_p8), 2.0, %v315_v30  ;;  %v316_v34 = vld [vmem:[#allocation3 + $0x8] sm:$0xff] (%p298_p8)  ;;  %v309_v36 = vld [vmem:[%s308_s20] sm:$0xff] (%p298_p8)  ;;  %v311_v38 = vld [vmem:[%s308_s20 + $0x10] sm:$0xff] (%p298_p8) }
  0xf9   : > { %v320_v35 = vmul.f32 2.0, %v316_v34  ;;  %v310_v37 = vld [vmem:[%s308_s20 + $0x8] sm:$0xff]  ;;  %v312_v39 = vld [vmem:[%s308_s20 + $0x18] sm:$0xff]  ;;  %v321_v40 = vsub.f32 %v317_v31, %v309_v36 }
  0xfa   : > { %v322_v41 = vsub.f32 %v318_v32, %v310_v37  ;;  %v323_v42 = vsub.f32 %v319_v33, %v311_v38 }
  0xfb   : > { %v324_v43 = vsub.f32 %v320_v35, %v312_v39  ;;  %531 = vst [vmem:[%s908_s17 + $0x20] sm:$0xff] %v321_v40 }
  0xfc   : > { %532 = vst [vmem:[%s908_s17 + $0x28] sm:$0xff] %v322_v41 }
  0xfd   : > { %533 = vst [vmem:[%s908_s17 + $0x30] sm:$0xff] %v323_v42 }
  0xfe   : > { %534 = vst [vmem:[%s908_s17 + $0x38] sm:$0xff] %v324_v43 }
  0xff PF: > { %p331_p9 = scmp.eq.s32.totalorder %s810_s12, 3 }
 0x100   : > { %v360_v55 = vld [vmem:[#allocation7 + $0x8] sm:$0xff] (%p331_p9)  ;;  %vm363_vm0 = vcmask (%p331_p9), 261120   ;;  %v362_v60 = vld [vmem:[#allocation7 + $0x18] sm:$0xff] (%p331_p9)  ;;  %v359_v2 = vld [vmem:[#allocation7] sm:$0xff] (%p331_p9) }
 0x101   : > { %335 = sbr.rel (!%p331_p9) target bundleno = 428 (0x1ac), region = 65  ;;  %v361_v3 = vld [vmem:[#allocation7 + $0x10] sm:$0xff] (%p331_p9) }
 0x105   : > { %v354_v44 = vld [vmem:[#allocation2 + $0x78] sm:$0xff] (%p331_p9)  ;;  %v353_v45 = vld [vmem:[#allocation2 + $0x70] sm:$0xff] (%p331_p9)  ;;  %v352_v46 = vld [vmem:[#allocation2 + $0x68] sm:$0xff] (%p331_p9) }
 0x106   : > { %370 = vmatpush.msra.mxu0 %v354_v44  ;;  %595 = vmatpush.msra.mxu2 %v354_v44  ;;  %v351_v47 = vld [vmem:[#allocation2 + $0x60] sm:$0xff]  ;;  %v358_v48 = vld [vmem:[#allocation2 + $0x98] sm:$0xff]  ;;  %v357_v49 = vld [vmem:[#allocation2 + $0x90] sm:$0xff] }
 0x107   : > { %v350_v50 = vld [vmem:[#allocation2 + $0x58] sm:$0xff]  ;;  %405 = vmatpush.msra.mxu1 %v358_v48  ;;  %v356_v51 = vld [vmem:[#allocation2 + $0x88] sm:$0xff]  ;;  %v349_v52 = vld [vmem:[#allocation2 + $0x50] sm:$0xff] }
 0x108   : > { %371 = vmatpush.msra.mxu0 %v353_v45  ;;  %596 = vmatpush.msra.mxu2 %v353_v45  ;;  %v355_v53 = vld [vmem:[#allocation2 + $0x80] sm:$0xff]  ;;  %v348_v54 = vld [vmem:[#allocation2 + $0x48] sm:$0xff]  ;;  %v346_v57 = vld [vmem:[#allocation2 + $0x38] sm:$0xff] }
 0x109   : > { %406 = vmatpush.msra.mxu1 %v357_v49  ;;  %v347_v56 = vld [vmem:[#allocation2 + $0x40] sm:$0xff]  ;;  %v345_v58 = vld [vmem:[#allocation2 + $0x30] sm:$0xff]  ;;  %v344_v59 = vld [vmem:[#allocation2 + $0x28] sm:$0xff] }
 0x10a   : > { %372 = vmatpush.msra.mxu0 %v352_v46  ;;  %597 = vmatpush.msra.mxu2 %v352_v46  ;;  %v343_v61 = vld [vmem:[#allocation2 + $0x20] sm:$0xff]  ;;  %v342_v62 = vld [vmem:[#allocation2 + $0x18] sm:$0xff]  ;;  %v341_v63 = vld [vmem:[#allocation2 + $0x10] sm:$0xff] }
 0x10b   : > { %407 = vmatpush.msra.mxu1 %v356_v51  ;;  %v340_v0 = vld [vmem:[#allocation2 + $0x8] sm:$0xff]  ;;  %v339_v1 = vld [vmem:[#allocation2] sm:$0xff] }
 0x10c   : > { %373 = vmatpush.msra.mxu0 %v351_v47  ;;  %598 = vmatpush.msra.mxu2 %v351_v47 }
 0x10d   : > { %408 = vmatpush.msra.mxu1 %v355_v53 }
 0x10e   : > { %374 = vmatpush.msra.mxu0 %v350_v50  ;;  %599 = vmatpush.msra.mxu2 %v350_v50 }
 0x10f   : > { %536 = vmatmul.msk.f32.vlgmr.msra.gmra.mxu1 %vm363_vm0, %v360_v55 }
 0x110   : > { %375 = vmatpush.msra.mxu0 %v349_v52  ;;  %600 = vmatpush.msra.mxu2 %v349_v52 }
 0x112   : > { %376 = vmatpush.msra.mxu0 %v348_v54  ;;  %601 = vmatpush.msra.mxu2 %v348_v54 }
 0x114   : > { %377 = vmatpush.msra.mxu0 %v347_v56  ;;  %602 = vmatpush.msra.mxu2 %v347_v56 }
 0x116   : > { %378 = vmatpush.msra.mxu0 %v346_v57  ;;  %603 = vmatpush.msra.mxu2 %v346_v57 }
 0x117   : > { %537 = vmatmul.msk.f32.gmra.mxu1 %vm363_vm0, %v362_v60 }
 0x118   : > { %379 = vmatpush.msra.mxu0 %v345_v58  ;;  %604 = vmatpush.msra.mxu2 %v345_v58 }
 0x11a   : > { %380 = vmatpush.msra.mxu0 %v344_v59  ;;  %605 = vmatpush.msra.mxu2 %v344_v59 }
 0x11c   : > { %381 = vmatpush.msra.mxu0 %v343_v61  ;;  %606 = vmatpush.msra.mxu2 %v343_v61 }
 0x11e   : > { %382 = vmatpush.msra.mxu0 %v342_v62  ;;  %607 = vmatpush.msra.mxu2 %v342_v62 }
 0x120   : > { %383 = vmatpush.msra.mxu0 %v341_v63  ;;  %608 = vmatpush.msra.mxu2 %v341_v63 }
 0x122   : > { %384 = vmatpush.msra.mxu0 %v340_v0  ;;  %609 = vmatpush.msra.mxu2 %v340_v0 }
 0x124   : > { %385 = vmatpush.msra.mxu0 %v339_v1  ;;  %610 = vmatpush.msra.mxu2 %v339_v1 }
 0x125   : > { %386 = vmatmul.f32.vlgmr.msra.gmra.mxu0 %v359_v2  ;;  %389 = vmatmul.f32.vlgmr.msra.gmra.mxu2 %v361_v3 }
 0x18c   : > { %v410_v4 = vpop.f32.mrf.mxu1 }
 0x194   : > { %v413_v7 = vpop.f32.mrf.mxu1 }
 0x1a2   : > { %v387_v5 = vpop.f32.mrf.mxu0 }
 0x1a3   : > { %v411_v6 = vadd.f32 %v410_v4, %v387_v5 }
 0x1a5   : > { %417 = vst [vmem:[#allocation9] sm:$0xff] %v411_v6 }
 0x1a8   : > { %v390_v8 = vpop.f32.mrf.mxu2 }
 0x1a9   : > { %v414_v9 = vadd.f32 %v413_v7, %v390_v8 }
 0x1ab   : > { %418 = vst [vmem:[#allocation9 + $0x8] sm:$0xff] %v414_v9 }
 0x1ac PF: > { %p634_p10 = scmp.eq.s32.totalorder %s511_s15, 3  ;;  %s426_s22 = sshll.u32 %s946_s3, 4  ;;  %s427_s22 = int_to_ptr.hbm [resolvable:$true] %s426_s22 }
 0x1ad   : > { %s827_s23 = smov [#allocation9]   ;;  %s828_s25 = smov 128  }
 0x1ae   : > { %s424_s24 = sshll.u32 %s827_s23, 4  ;;  %s829_s26 = smov 8   ;;  %s425_s24 = int_to_ptr.vmem [resolvable:$true] %s424_s24 }
 0x1af   : > { %620 = dma.vmem_to_hbm [thread:$0]  (%p634_p10), %s425_s24, 256, %s427_s22, [#allocation6], %s828_s25, %s828_s25, %s829_s26  }
 0x1b0   : > { %805 = dma.done.wait (%p634_p10), [#allocation6], 256  }
 0x1b1   : > { %807 = vsyncadd (%p634_p10), [#allocation6], 4294967040 }
 0x1b2 PF: > { %s16_s14 = sadd.s32 1, %s818_s14   ;;  %s949_s12 = smov %s814_s13 }
 0x1b3   : > { %p13_p11 = scmp.ge.s32.totalorder %s16_s14, 6   ;;  %s950_s13 = smov %s952_s16 }
 0x1b5   :  { %15 = sbr.rel (!%p13_p11) target bundleno = 4 (0x4), region = 97 }
 0x1ba   :  { %443 = vsyncpa [#allocation5], 1 }
 0x1bb   :  { %445 = vsyncpa [#allocation5 + $0x1], 1 }
 0x1bc   :  { %446 = vsyncpa [#allocation8], 1 }
 0x1bd   :  { %447 = vsyncpa [#allocation6], 1 }
 0x1be   :  { %449 = vsyncpa [#allocation6 + $0x1], 1 }

</bundles_post_ra>
